<compile_context>
chip_gen: v7x
topology: tpu7x:2x2x1
jax: 0.10.0
libtpu: 0.0.40
codegen_flags: <defaults>
</compile_context>

<pallas_src>
import functools

import numpy as np
import jax
import jax.numpy as jnp
from jax.experimental import pallas as pl
from jax.experimental.pallas import tpu as pltpu


def _round_up(x, m):
    return (x + m - 1) // m * m


def _pick_vmem_limit():
    """Per-generation scoped-VMEM budget, always <= physical VMEM."""
    try:
        cap = int(pltpu.get_tpu_info().vmem_capacity_bytes)
        if cap > 0:
            return max(32 * 1024 * 1024, min(cap * 3 // 4, 64 * 1024 * 1024))
    except Exception:
        pass
    return 48 * 1024 * 1024  # safe on v5e / v6e / v7x


_VMEM_LIMIT = _pick_vmem_limit()


# ----------------------------------------------------------------------------
# Fused (matmul + BN-fold + residual + ReLU) kernel, fully tiled (M, N, K)
# ----------------------------------------------------------------------------
def _fused_mm_kernel(*refs, relu, has_res):
    """acc += A @ W ; on last K step: out = [relu](acc*scale + bias [+ res])."""
    if has_res:
        a_ref, w_ref, sb_ref, r_ref, o_ref, acc_ref = refs
    else:
        a_ref, w_ref, sb_ref, o_ref, acc_ref = refs

    k = pl.program_id(2)

    @pl.when(k == 0)
    def _():
        acc_ref[...] = jnp.zeros_like(acc_ref)

    acc_ref[...] += jnp.dot(a_ref[...], w_ref[...],
                            preferred_element_type=jnp.float32)

    @pl.when(k == pl.num_programs(2) - 1)
    def _():
        y = acc_ref[...] * sb_ref[0:1, :] + sb_ref[1:2, :]
        if has_res:
            y = y + r_ref[...].astype(jnp.float32)
        if relu:
            y = jnp.maximum(y, 0.0)
        o_ref[...] = y.astype(o_ref.dtype)


def fused_matmul(a, w, sb, residual=None, relu=False, out_dtype=jnp.bfloat16):
    """out[:M, :Np] = [relu]((a @ w) * scale + bias [+ residual]).

    a: (M, K) bf16; w: (K, Np) bf16 (pre-padded, K and Np multiples of 128);
    sb: (2, Np) f32 (scale row 0, bias row 1); residual: (M, Np) bf16.
    Output keeps the padded Np so activations stay channel-padded downstream.
    """
    M, K = a.shape
    Kw, Np = w.shape
    assert K == Kw, (K, Kw)
    assert Kw % 128 == 0 and Np % 128 == 0, "weights must be pre-padded"

    # bf16-friendly M tiles (16-row multiples), fat N/K tiles for MXU width.
    tm = 512 if M > 512 else _round_up(M, 16)
    Mp = _round_up(M, tm)
    bn = next(b for b in (512, 256, 128) if Np % b == 0)
    bk_cap = 1024 if Mp <= 1024 else 512
    bk = next(b for b in (1024, 512, 256, 128) if b <= bk_cap and Kw % b == 0)

    # v7x: keep at least 2 blocks along a "parallel" axis so both TCs get work.
    if Mp // tm == 1 and Np // bn == 1:
        if bn > 128:
            bn //= 2
        elif tm % 32 == 0:
            tm //= 2

    a_p = jnp.pad(a, ((0, Mp - M), (0, 0))) if Mp != M else a

    inputs = [a_p, w, sb]
    in_specs = [
        pl.BlockSpec((tm, bk), lambda i, j, k: (i, k)),
        pl.BlockSpec((bk, bn), lambda i, j, k: (k, j)),
        pl.BlockSpec((2, bn), lambda i, j, k: (0, j)),
    ]
    has_res = residual is not None
    if has_res:
        assert residual.shape == (M, Np), (residual.shape, (M, Np))
        r_p = (jnp.pad(residual, ((0, Mp - M), (0, 0)))
               if Mp != M else residual)
        inputs.append(r_p)
        in_specs.append(pl.BlockSpec((tm, bn), lambda i, j, k: (i, j)))

    kernel = functools.partial(_fused_mm_kernel, relu=relu, has_res=has_res)
    bytes_accessed = 2 * (Mp * Kw + Kw * Np + Mp * Np) + 8 * Np
    out = pl.pallas_call(
        kernel,
        out_shape=jax.ShapeDtypeStruct((Mp, Np), out_dtype),
        grid_spec=pltpu.PrefetchScalarGridSpec(
            num_scalar_prefetch=0,
            grid=(Mp // tm, Np // bn, Kw // bk),
            in_specs=in_specs,
            out_specs=pl.BlockSpec((tm, bn), lambda i, j, k: (i, j)),
            scratch_shapes=[pltpu.VMEM((tm, bn), jnp.float32)],
        ),
        compiler_params=pltpu.CompilerParams(
            dimension_semantics=("parallel", "parallel", "arbitrary"),
            vmem_limit_bytes=_VMEM_LIMIT),
        cost_estimate=pl.CostEstimate(
            flops=2 * Mp * Kw * Np, transcendentals=0,
            bytes_accessed=bytes_accessed),
    )(*inputs)
    return out[:M] if Mp != M else out


# ----------------------------------------------------------------------------
# Direct (im2col-free) 3x3 stride-1 conv: single halo DMA per tile, double-
# buffered across M-tiles, VMEM-resident weights, 9 accumulating MXU matmuls.
# ----------------------------------------------------------------------------
def _direct_conv_kernel(x_hbm, w_ref, sb_ref, o_ref, a_buf, sem, acc_ref,
                        *, K, Wp, tm, relu):
    i = pl.program_id(0)
    nt = pl.num_programs(0)
    slot = i % 2
    rows = a_buf.shape[1]          # tm + halo (rounded to a sublane multiple)
    KK = K * K

    def tile_dma(tile_idx, s):
        start = pl.multiple_of(tile_idx * tm, 8)
        return pltpu.make_async_copy(
            x_hbm.at[pl.ds(start, rows)], a_buf.at[s], sem.at[s])

    # Prime the pipeline for the very first tile.
    @pl.when(i == 0)
    def _():
        tile_dma(i, slot).start()

    # Wait on exactly the descriptor that was started for tile i.
    tile_dma(i, slot).wait()

    # Prefetch tile i+1 into the other buffer while we compute on tile i.
    @pl.when(i + 1 < nt)
    def _():
        tile_dma(i + 1, 1 - slot).start()

    # 9 accumulating matmuls on in-VMEM row-shifted slices of the halo buffer.
    for qq in range(KK):
        kh, kw = qq // K, qq % K
        a = a_buf[slot, pl.ds(kh * Wp + kw, tm), :]
        contrib = jnp.dot(a, w_ref[qq], preferred_element_type=jnp.float32)
        if qq == 0:
            acc_ref[...] = contrib
        else:
            acc_ref[...] += contrib

    y = acc_ref[...] * sb_ref[0:1, :] + sb_ref[1:2, :]
    if relu:
        y = jnp.maximum(y, 0.0)
    o_ref[...] = y.astype(o_ref.dtype)


@functools.partial(jax.jit, static_argnames=("relu",))
def conv3x3_s1_bn(x, wm, sb, *, relu=True):
    """3x3 / stride-1 / pad-1 conv + folded BN (+ReLU), no im2col materialization.

    x: (N,H,W,Cin) bf16 (Cin padded to 128-multiple);
    wm: (9, Cin, Cout) bf16 (pre-padded); sb: (2, Cout) f32.
    """
    N, H, W_, Cin = x.shape
    KK, Cin_w, Cout = wm.shape
    K = int(round(KK ** 0.5))
    assert K * K == KK and Cin == Cin_w
    P = (K - 1) // 2
    Hp, Wp = H + 2 * P, W_ + 2 * P
    rpi = Hp * Wp                                 # flat rows per padded image
    Mflat = N * rpi                               # outputs on the padded grid
    tm = 512 if Mflat > 512 else _round_up(Mflat, 16)
    Mout = _round_up(Mflat, tm)
    halo = (K - 1) * Wp + (K - 1)
    halo_r = _round_up(halo, 8)
    need_rows = Mout + halo_r

    # Single fused pad: spatial P-pad + enough extra (zero) images on the batch
    # axis to cover the halo / tile-rounding rows the kernel will read.
    n_extra = max(0, -(-(need_rows - Mflat) // rpi))
    xp = jnp.pad(x, ((0, n_extra), (P, P), (P, P), (0, 0)))
    x_flat = xp.reshape((N + n_extra) * rpi, Cin)

    kernel = functools.partial(_direct_conv_kernel, K=K, Wp=Wp, tm=tm, relu=relu)
    out = pl.pallas_call(
        kernel,
        out_shape=jax.ShapeDtypeStruct((Mout, Cout), jnp.bfloat16),
        grid_spec=pltpu.PrefetchScalarGridSpec(
            num_scalar_prefetch=0,
            grid=(Mout // tm,),
            in_specs=[
                pl.BlockSpec(memory_space=pl.ANY),                 # activation (HBM)
                pl.BlockSpec((KK, Cin, Cout), lambda i: (0, 0, 0)),  # VMEM-resident W
                pl.BlockSpec((2, Cout), lambda i: (0, 0)),           # scale / bias
            ],
            out_specs=pl.BlockSpec((tm, Cout), lambda i: (i, 0)),
            scratch_shapes=[
                pltpu.VMEM((2, tm + halo_r, Cin), jnp.bfloat16),   # halo double-buffer
                pltpu.SemaphoreType.DMA((2,)),
                pltpu.VMEM((tm, Cout), jnp.float32),               # f32 accumulator
            ],
        ),
        compiler_params=pltpu.CompilerParams(
            dimension_semantics=("arbitrary",),   # cross-tile prefetch carries state
            vmem_limit_bytes=_VMEM_LIMIT),
        cost_estimate=pl.CostEstimate(
            flops=2 * Mout * Cin * Cout * KK, transcendentals=0,
            bytes_accessed=2 * ((Mout + halo_r) * Cin + KK * Cin * Cout
                                + Mout * Cout)),
    )(x_flat, wm, sb)

    out = out[:Mflat].reshape(N, Hp, Wp, Cout)[:, :H, :W_, :]
    return out


# ----------------------------------------------------------------------------
# 1x1 convs (pure reshape / strided slice into fused_matmul)
# ----------------------------------------------------------------------------
@functools.partial(jax.jit, static_argnames=("stride", "relu"))
def conv1x1_bn(x, wm, sb, *, stride=1, relu=True):
    if stride > 1:
        x = x[:, ::stride, ::stride, :]
    N, Ho, Wo, Cin = x.shape
    a = x.reshape(N * Ho * Wo, Cin)
    y = fused_matmul(a, wm, sb, relu=relu)
    return y.reshape(N, Ho, Wo, wm.shape[1])


@jax.jit
def conv1x1_bn_add(x, wm, sb, residual):
    """1x1 conv + BN + residual add + ReLU (bottleneck conv3)."""
    N, H, W_, Cin = x.shape
    Cout = wm.shape[1]
    a = x.reshape(N * H * W_, Cin)
    r = residual.reshape(N * H * W_, Cout)
    y = fused_matmul(a, wm, sb, residual=r, relu=True)
    return y.reshape(N, H, W_, Cout)


# ----------------------------------------------------------------------------
# im2col path (only the 7x7/stride-2 stem and the 3 stride-2 3x3 convs)
# ----------------------------------------------------------------------------
def _extract_patches(x, ksize, stride, padding):
    N, H, W_, C = x.shape
    if padding > 0:
        x = jnp.pad(x, ((0, 0), (padding, padding), (padding, padding), (0, 0)))
    Hp, Wp = H + 2 * padding, W_ + 2 * padding
    Ho = (Hp - ksize) // stride + 1
    Wo = (Wp - ksize) // stride + 1
    cols = []
    for kh in range(ksize):
        for kw in range(ksize):
            cols.append(x[:, kh:kh + stride * Ho:stride,
                          kw:kw + stride * Wo:stride, :])
    patches = jnp.concatenate(cols, axis=-1)  # ordering (kh, kw, cin)
    return patches, Ho, Wo


@functools.partial(jax.jit, static_argnames=("ksize", "stride", "padding", "relu"))
def conv_im2col_bn(x, wm, sb, *, ksize, stride, padding, relu=True):
    N = x.shape[0]
    patches, Ho, Wo = _extract_patches(x, ksize, stride, padding)
    a = patches.reshape(N * Ho * Wo, -1)
    Kw = wm.shape[0]
    if a.shape[1] < Kw:                       # stem: 147 -> 256 K-pad only
        a = jnp.pad(a, ((0, 0), (0, Kw - a.shape[1])))
    y = fused_matmul(a, wm, sb, relu=relu)
    return y.reshape(N, Ho, Wo, wm.shape[1])


# ----------------------------------------------------------------------------
# Max-pool 3x3 / stride 2 (M-tiled reduce) and global average pool
# ----------------------------------------------------------------------------
def _max_reduce_kernel(x_ref, o_ref):
    r = x_ref[0]
    for i in range(1, x_ref.shape[0]):
        r = jnp.maximum(r, x_ref[i])
    o_ref[...] = r


@jax.jit
def maxpool_3x3_s2(x):
    # TODO(synk): still materializes the 9-way window stack in HBM (single stem layer).
    N, H, W_, C = x.shape
    pad_val = float(jnp.finfo(x.dtype).min)
    xp = jnp.pad(x, ((0, 0), (1, 1), (1, 1), (0, 0)), constant_values=pad_val)
    Ho = (H + 2 - 3) // 2 + 1
    Wo = (W_ + 2 - 3) // 2 + 1
    cols = [xp[:, kh:kh + 2 * Ho:2, kw:kw + 2 * Wo:2, :]
            for kh in range(3) for kw in range(3)]
    M = N * Ho * Wo
    tm = 512 if M > 512 else _round_up(M, 16)
    Mp = _round_up(M, tm)
    stacked = jnp.stack(cols, axis=0).reshape(9, M, C)
    if Mp != M:
        stacked = jnp.pad(stacked, ((0, 0), (0, Mp - M), (0, 0)),
                          constant_values=pad_val)
    out = pl.pallas_call(
        _max_reduce_kernel,
        out_shape=jax.ShapeDtypeStruct((Mp, C), x.dtype),
        grid_spec=pltpu.PrefetchScalarGridSpec(
            num_scalar_prefetch=0,
            grid=(Mp // tm,),
            in_specs=[pl.BlockSpec((9, tm, C), lambda i: (0, i, 0))],
            out_specs=pl.BlockSpec((tm, C), lambda i: (i, 0)),
        ),
        compiler_params=pltpu.CompilerParams(
            dimension_semantics=("parallel",),
            vmem_limit_bytes=_VMEM_LIMIT),
    )(stacked)
    return out[:M].reshape(N, Ho, Wo, C)


def _mean_reduce_kernel(x_ref, o_ref):
    hw = x_ref.shape[0]
    acc = x_ref[0].astype(jnp.float32)
    for i in range(1, hw):
        acc = acc + x_ref[i].astype(jnp.float32)
    o_ref[...] = (acc * (1.0 / hw)).astype(o_ref.dtype)


@jax.jit
def global_avgpool(x):
    N, H, W_, C = x.shape
    xr = jnp.transpose(x.reshape(N, H * W_, C), (1, 0, 2))  # (HW, N, C)
    out = pl.pallas_call(
        _mean_reduce_kernel,
        out_shape=jax.ShapeDtypeStruct((N, C), x.dtype),
        in_specs=[pl.BlockSpec(memory_space=pltpu.MemorySpace.VMEM)],
        out_specs=pl.BlockSpec(memory_space=pltpu.MemorySpace.VMEM),
        compiler_params=pltpu.CompilerParams(vmem_limit_bytes=_VMEM_LIMIT),
    )(xr)
    return out


# ----------------------------------------------------------------------------
# Fused dual fully-connected head (resnet.fc 2048->1000, then fc 1000->class_num)
# Runs entirely in f32 to track the PyTorch reference numerics.
# ----------------------------------------------------------------------------
def _dual_fc_kernel(x_ref, w1_ref, b1_ref, w2_ref, b2_ref, o_ref):
    h = jnp.dot(x_ref[...], w1_ref[...],
                preferred_element_type=jnp.float32) + b1_ref[...]
    y = jnp.dot(h, w2_ref[...],
                preferred_element_type=jnp.float32) + b2_ref[...]
    o_ref[...] = y


@jax.jit
def dual_fc(x, w1, b1, w2, b2):
    B = x.shape[0]
    Bp = _round_up(B, 8)
    x_p = jnp.pad(x.astype(jnp.float32), ((0, Bp - B), (0, 0)))
    out = pl.pallas_call(
        _dual_fc_kernel,
        out_shape=jax.ShapeDtypeStruct((Bp, w2.shape[1]), jnp.float32),
        in_specs=[pl.BlockSpec(memory_space=pltpu.MemorySpace.VMEM)] * 5,
        out_specs=pl.BlockSpec(memory_space=pltpu.MemorySpace.VMEM),
        compiler_params=pltpu.CompilerParams(vmem_limit_bytes=_VMEM_LIMIT),
    )(x_p, w1, b1, w2, b2)
    return out


# ----------------------------------------------------------------------------
# ResNet-152 parameters (synthetic, pre-packed & pre-padded for the kernels)
# ----------------------------------------------------------------------------
CFG = [(64, 3, 1), (128, 8, 2), (256, 36, 2), (512, 3, 2)]  # (planes, blocks, stride)


def build_params(class_num, seed=0):
    rng = np.random.default_rng(seed)

    def conv_w(cout, cin, k):
        std = 0.5 / np.sqrt(cin * k * k)
        return rng.normal(0.0, std, size=(cout, cin, k, k)).astype(np.float32)

    def bn_sb(c):
        cp = _round_up(c, 128)
        gamma = rng.normal(1.0, 0.05, c).astype(np.float32)
        beta = rng.normal(0.0, 0.05, c).astype(np.float32)
        mean = rng.normal(0.0, 0.05, c).astype(np.float32)
        var = np.abs(rng.normal(1.0, 0.05, c)).astype(np.float32)
        scale = gamma / np.sqrt(var + 1e-5)
        bias = beta - mean * scale
        sb = np.zeros((2, cp), np.float32)
        sb[0, :c] = scale
        sb[1, :c] = bias
        return jnp.asarray(sb)                                   # (2, Cp) f32

    def pack_1x1(w):       # (Cout,Cin,1,1) -> (Cin_p, Cout_p) bf16
        cout, cin = w.shape[0], w.shape[1]
        cinp, coutp = _round_up(cin, 128), _round_up(cout, 128)
        wp = np.zeros((cinp, coutp), np.float32)
        wp[:cin, :cout] = w[:, :, 0, 0].T
        return jnp.asarray(wp, jnp.bfloat16)

    def pack_direct(w):    # (Cout,Cin,K,K) -> (K*K, Cin_p, Cout_p) bf16
        cout, cin, k, _ = w.shape
        cinp, coutp = _round_up(cin, 128), _round_up(cout, 128)
        wp = np.zeros((k * k, cinp, coutp), np.float32)
        wp[:, :cin, :cout] = np.transpose(w, (2, 3, 1, 0)).reshape(k * k, cin, cout)
        return jnp.asarray(wp, jnp.bfloat16)

    def pack_im2col(w, pad_cin=True):   # -> (round_up(K*K*Cin_p,128), Cout_p) bf16
        cout, cin, k, _ = w.shape
        cinp = _round_up(cin, 128) if pad_cin else cin
        coutp = _round_up(cout, 128)
        wp = np.zeros((k, k, cinp, coutp), np.float32)
        wp[:, :, :cin, :cout] = np.transpose(w, (2, 3, 1, 0))
        wp = wp.reshape(k * k * cinp, coutp)
        kp = _round_up(wp.shape[0], 128)
        if kp != wp.shape[0]:
            wp = np.pad(wp, ((0, kp - wp.shape[0]), (0, 0)))
        return jnp.asarray(wp, jnp.bfloat16)

    params = {"conv1": {"w": pack_im2col(conv_w(64, 3, 7), pad_cin=False),
                        "sb": bn_sb(64)}}

    layers = []
    cin = 64
    for planes, blocks, stride in CFG:
        stage = []
        for bidx in range(blocks):
            s = stride if bidx == 0 else 1
            p = {}
            p["w1"] = pack_1x1(conv_w(planes, cin, 1))
            p["sb1"] = bn_sb(planes)
            w2 = conv_w(planes, planes, 3)
            p["w2"] = pack_direct(w2) if s == 1 else pack_im2col(w2)
            p["sb2"] = bn_sb(planes)
            p["w3"] = pack_1x1(conv_w(planes * 4, planes, 1))
            p["sb3"] = bn_sb(planes * 4)
            if s != 1 or cin != planes * 4:
                p["wd"] = pack_1x1(conv_w(planes * 4, cin, 1))
                p["sbd"] = bn_sb(planes * 4)
            stage.append(p)
            cin = planes * 4
        layers.append(stage)
    params["layers"] = layers

    # FC heads: pre-transposed to (in, out), zero-padded to lane multiples, f32.
    w_fc1 = rng.normal(0, 1 / np.sqrt(2048), (1000, 2048)).astype(np.float32)
    b_fc1 = rng.normal(0, 0.01, (1000,)).astype(np.float32)
    w_fc2 = rng.normal(0, 1 / np.sqrt(1000), (class_num, 1000)).astype(np.float32)
    b_fc2 = rng.normal(0, 0.01, (class_num,)).astype(np.float32)
    n1p = _round_up(1000, 128)
    ncp = _round_up(class_num, 128)
    w1 = np.zeros((2048, n1p), np.float32); w1[:, :1000] = w_fc1.T
    b1 = np.zeros((1, n1p), np.float32);    b1[0, :1000] = b_fc1
    w2 = np.zeros((n1p, ncp), np.float32);  w2[:1000, :class_num] = w_fc2.T
    b2 = np.zeros((1, ncp), np.float32);    b2[0, :class_num] = b_fc2
    params["fc"] = {"w1": jnp.asarray(w1), "b1": jnp.asarray(b1),
                    "w2": jnp.asarray(w2), "b2": jnp.asarray(b2)}
    return params


# ----------------------------------------------------------------------------
# Forward pass
# ----------------------------------------------------------------------------
def bottleneck(x, p, stride):
    identity = x
    out = conv1x1_bn(x, p["w1"], p["sb1"], stride=1, relu=True)
    if stride == 1:
        out = conv3x3_s1_bn(out, p["w2"], p["sb2"], relu=True)
    else:
        out = conv_im2col_bn(out, p["w2"], p["sb2"],
                             ksize=3, stride=stride, padding=1, relu=True)
    if "wd" in p:
        identity = conv1x1_bn(x, p["wd"], p["sbd"], stride=stride, relu=False)
    out = conv1x1_bn_add(out, p["w3"], p["sb3"], identity)
    return out


def shape_resnet152_forward(params, x_nchw, class_num):
    batch = x_nchw.shape[0]
    # layout: PyTorch NCHW input -> NHWC bf16 for all Pallas kernels.
    x = jnp.transpose(x_nchw, (0, 2, 3, 1)).astype(jnp.bfloat16)

    # stem: 7x7/2 conv + BN + ReLU, 3x3/2 maxpool
    x = conv_im2col_bn(x, params["conv1"]["w"], params["conv1"]["sb"],
                       ksize=7, stride=2, padding=3, relu=True)
    x = maxpool_3x3_s2(x)

    # 4 stages of bottleneck blocks: [3, 8, 36, 3]
    for stage_idx, (planes, blocks, stride) in enumerate(CFG):
        for bidx in range(blocks):
            s = stride if bidx == 0 else 1
            x = bottleneck(x, params["layers"][stage_idx][bidx], s)

    # adaptive avg pool to 1x1 + flatten, then fused 2048->1000->class_num head
    x = global_avgpool(x)                                    # (N, 2048) bf16
    fc = params["fc"]
    y = dual_fc(x, fc["w1"], fc["b1"], fc["w2"], fc["b2"])   # (Bp, ncp) f32
    return y[:batch, :class_num]


# ----------------------------------------------------------------------------
if __name__ == "__main__":
    class_num = 10
    batch, channels, spatial = 2, 3, 32  # small, ResNet-compatible input

    key = jax.random.PRNGKey(0)
    x = jax.random.normal(key, (batch, channels, spatial, spatial),
                          dtype=jnp.float32)

    params = build_params(class_num, seed=0)

    out = shape_resnet152_forward(params, x, class_num)
    out = jax.block_until_ready(out)

    assert out.shape == (batch, class_num), out.shape
    assert bool(jnp.all(jnp.isfinite(out))), "non-finite output"
    print("KERNEL_OK")
</pallas_src>

<mosaic_0001>
module attributes {stable_mosaic.version = 11 : i64} {
  func.func @_fused_mm_kernel(%arg0: i32, %arg1: i32, %arg2: i32, %arg3: memref<256x256xbf16, #tpu.memory_space<vmem>>, %arg4: memref<256x128xbf16, #tpu.memory_space<vmem>>, %arg5: memref<2x128xf32, #tpu.memory_space<vmem>>, %arg6: memref<256x128xbf16, #tpu.memory_space<vmem>>, %arg7: memref<256x128xf32, #tpu.memory_space<vmem>>) attributes {dimension_semantics = [#tpu.dimension_semantics<parallel>, #tpu.dimension_semantics<parallel>, #tpu.dimension_semantics<arbitrary>], iteration_bounds = array<i64: 2, 1, 1>, scalar_prefetch = 0 : i64, scratch_operands = 1 : i64, tpu.core_type = #tpu.core_type<tc>, window_params = [{transform_indices = @transform_0, window_bounds = array<i64: 256, 256>}, {transform_indices = @transform_1, window_bounds = array<i64: 256, 128>}, {transform_indices = @transform_2, window_bounds = array<i64: 2, 128>}, {transform_indices = @transform_3, window_bounds = array<i64: 256, 128>}]} {
    %c0_i32 = arith.constant 0 : i32
    %0 = arith.cmpi eq, %arg2, %c0_i32 : i32
    %1 = arith.extui %0 : i1 to i32
    %c0_i32_0 = arith.constant 0 : i32
    %2 = arith.cmpi ne, %1, %c0_i32_0 : i32
    scf.if %2 {
      %cst_10 = arith.constant 0.000000e+00 : f32
      %12 = vector.broadcast %cst_10 : f32 to vector<256x128xf32>
      %c0_11 = arith.constant 0 : index
      %c0_12 = arith.constant 0 : index
      %13 = vector.load %arg7[%c0_11, %c0_12] : memref<256x128xf32, #tpu.memory_space<vmem>>, vector<256x128xf32>
      tpu.vector_store %arg7[%c0_11, %c0_12], %12 {strides = array<i32>} : memref<256x128xf32, #tpu.memory_space<vmem>>, vector<256x128xf32>,
    } else {
    }
    %c0 = arith.constant 0 : index
    %c0_1 = arith.constant 0 : index
    %3 = vector.load %arg7[%c0, %c0_1] : memref<256x128xf32, #tpu.memory_space<vmem>>, vector<256x128xf32>
    %c0_2 = arith.constant 0 : index
    %c0_3 = arith.constant 0 : index
    %4 = vector.load %arg3[%c0_2, %c0_3] : memref<256x256xbf16, #tpu.memory_space<vmem>>, vector<256x256xbf16>
    %c0_4 = arith.constant 0 : index
    %c0_5 = arith.constant 0 : index
    %5 = vector.load %arg4[%c0_4, %c0_5] : memref<256x128xbf16, #tpu.memory_space<vmem>>, vector<256x128xbf16>
    %cst = arith.constant dense<0.000000e+00> : vector<256x128xf32>
    %6 = tpu.matmul %4, %5, %cst {dimension_numbers = #tpu.dot_dimension_numbers<[1], [0], [0], [1], [0, 0, 1, 1], [], []>} : vector<256x256xbf16>, vector<256x128xbf16>, vector<256x128xf32> -> vector<256x128xf32>
    %7 = arith.addf %3, %6 : vector<256x128xf32>
    %c0_6 = arith.constant 0 : index
    %c0_7 = arith.constant 0 : index
    %8 = vector.load %arg7[%c0_6, %c0_7] : memref<256x128xf32, #tpu.memory_space<vmem>>, vector<256x128xf32>
    tpu.vector_store %arg7[%c0_6, %c0_7], %7 {strides = array<i32>} : memref<256x128xf32, #tpu.memory_space<vmem>>, vector<256x128xf32>,
    %c0_i32_8 = arith.constant 0 : i32
    %9 = arith.cmpi eq, %arg2, %c0_i32_8 : i32
    %10 = arith.extui %9 : i1 to i32
    %c0_i32_9 = arith.constant 0 : i32
    %11 = arith.cmpi ne, %10, %c0_i32_9 : i32
    scf.if %11 {
      %c0_10 = arith.constant 0 : index
      %c0_11 = arith.constant 0 : index
      %12 = vector.load %arg7[%c0_10, %c0_11] : memref<256x128xf32, #tpu.memory_space<vmem>>, vector<256x128xf32>
      %c0_12 = arith.constant 0 : index
      %c0_13 = arith.constant 0 : index
      %13 = vector.load %arg5[%c0_12, %c0_13] : memref<2x128xf32, #tpu.memory_space<vmem>>, vector<1x128xf32>
      %14 = vector.broadcast %13 : vector<1x128xf32> to vector<256x128xf32>
      %15 = arith.mulf %12, %14 : vector<256x128xf32>
      %c1 = arith.constant 1 : index
      %c0_14 = arith.constant 0 : index
      %16 = vector.load %arg5[%c1, %c0_14] : memref<2x128xf32, #tpu.memory_space<vmem>>, vector<1x128xf32>
      %17 = vector.broadcast %16 : vector<1x128xf32> to vector<256x128xf32>
      %18 = arith.addf %15, %17 : vector<256x128xf32>
      %cst_15 = arith.constant 0.000000e+00 : f32
      %19 = vector.broadcast %cst_15 : f32 to vector<256x128xf32>
      %20 = arith.maximumf %18, %19 : vector<256x128xf32>
      %21 = arith.truncf %20 : vector<256x128xf32> to vector<256x128xbf16>
      %c0_16 = arith.constant 0 : index
      %c0_17 = arith.constant 0 : index
      %22 = vector.load %arg6[%c0_16, %c0_17] : memref<256x128xbf16, #tpu.memory_space<vmem>>, vector<256x128xbf16>
      tpu.vector_store %arg6[%c0_16, %c0_17], %21 {strides = array<i32>} : memref<256x128xbf16, #tpu.memory_space<vmem>>, vector<256x128xbf16>,
    } else {
    }
    return
  }
  func.func @transform_0(%arg0: i32, %arg1: i32, %arg2: i32) -> (i32, i32) {
    %c0_i32 = arith.constant 0 : i32
    return %arg0, %arg2 : i32, i32
  }
  func.func @transform_1(%arg0: i32, %arg1: i32, %arg2: i32) -> (i32, i32) {
    %c0_i32 = arith.constant 0 : i32
    return %arg2, %arg1 : i32, i32
  }
  func.func @transform_2(%arg0: i32, %arg1: i32, %arg2: i32) -> (i32, i32) {
    %c0_i32 = arith.constant 0 : i32
    %c0_i32_0 = arith.constant 0 : i32
    return %c0_i32, %arg1 : i32, i32
  }
  func.func @transform_3(%arg0: i32, %arg1: i32, %arg2: i32) -> (i32, i32) {
    %c0_i32 = arith.constant 0 : i32
    return %arg0, %arg1 : i32, i32
  }
}

</mosaic_0001>

<bundles_post_ra>
// kernel: conv_im2col_bn.1
= control target key start
LH: loop header
LB: loop body
LE: loop exit
PB: predicated region body
PF: predicated region fallthrough
CT: control target
= control target key end

     0   :  { %8 = vsyncpa [#allocation4], 0  ;;  %s2178_s0 = inlined_call_operand.vmem [shape: bf16[512,256], index: 0, kind: input, shape index: {}]   ;;  %s2179_s1 = inlined_call_operand.vmem [shape: bf16[256,128], index: 1, kind: input, shape index: {}]   ;;  %s2180_s2 = inlined_call_operand.vmem [shape: f32[2,128], index: 2, kind: input, shape index: {}]   ;;  %s2181_s3 = inlined_call_operand.hbm [shape: bf16[512,128], index: 3, kind: output, shape index: {}]  }
   0x1   :  { %10 = vsyncpa [#allocation4 + $0x1], 0  ;;  %s1885_s12 = smov 0   ;;  %s1887_s13 = smov 0  }
   0x2   :  { %s1889_s14 = smov 0   ;;  %s1891_s15 = smov 0  }
   0x3   :  { %s1893_s16 = smov 0   ;;  %s1895_s17 = smov 0  }
   0x4 LB: > { %s1306_s18 = sadd.s32 4294967295, %s1860_s17   ;;  %s1307_s19 = sadd.s32 4294967294, %s1860_s17   ;;  %s1860_s17 = sphi %s1895_s17, %s16_s17   ;;  %s1856_s16 = sphi %s1893_s16, %s2188_s16   ;;  %s1852_s15 = sphi %s1891_s15, %s2187_s15   ;;  %s1848_s14 = sphi %s1889_s14, %s2186_s14   ;;  %s1844_s13 = sphi %s1887_s13, %s2185_s13   ;;  %s1840_s12 = sphi %s1885_s12, %s2184_s12  }
   0x5   : > { %s35_s20 = sadd.s32 1, %s1856_s16  ;;  %s126_s21 = sadd.s32 1, %s1848_s14 }
   0x6   : > { %p37_p0 = scmp.ge.s32.totalorder %s35_s20, 2  ;;  %p136_p1 = scmp.ne.s32.totalorder %s1848_s14, %s1844_s13 }
   0x7   : > { %p137_p2 = scmp.eq.s32.totalorder %s1306_s18, 1  ;;  %p142_p3 = scmp.ne.s32.totalorder %s1844_s13, %s1840_s12 }
   0x8   : > { %s2190_s20 = smov (%p37_p0, %s35_s20), 0  ;;  %p143_p5 = scmp.eq.s32.totalorder %s1307_s19, 1 }
   0x9   : > { %p1925_p4 = por %p137_p2, %p136_p1  ;;  %s121_s23 = ssub.s32 %s1856_s16, %s2190_s20 }
   0xa   : > { %p1312_p6 = scmp.ge.s32.totalorder %s1860_s17, 1  ;;  %p124_p7 = scmp.eq.s32.totalorder %s121_s23, 0 }
   0xb   : > { %p1932_p8 = por %p143_p5, %p142_p3  ;;  %p195_p9 = scmp.lt.s32.totalorder %s1860_s17, 3 }
   0xc   : > { %s1938_s25 = scalar_select %p124_p7, %s1848_s14, %s126_s21  }
   0xd   : > { %p196_p10 = pnand %p1312_p6, %p195_p9 }
   0xe   : > { %v1718_v0 = vld [vmem:[%s2179_s1 + $0x40] sm:$0xff] (!%p196_p10)   ;;  %s1314_s28 = sshll.u32 (!%p196_p10), %s1852_s15, 5  ;;  %v1720_v2 = vld [vmem:[%s2179_s1 + $0x48] sm:$0xff] (!%p196_p10)   ;;  %v1722_v4 = vld [vmem:[%s2179_s1 + $0x50] sm:$0xff] (!%p196_p10)   ;;  %s1437_s9 = sshll.u32 (!%p196_p10), %s1852_s15, 11 }
   0xf   : > { %199 = sbr.rel (%p196_p10) target bundleno = 344 (0x158), region = 32  ;;  %v1719_v1 = vld [vmem:[%s2179_s1] sm:$0xff] (!%p196_p10)   ;;  %1533 = vmatprep.subr.bf16.mxu0 (!%p196_p10), %v1718_v0  ;;  %1645 = vmatprep.subr.bf16.mxu1 (!%p196_p10), %v1718_v0  ;;  %v1721_v3 = vld [vmem:[%s2179_s1 + $0x8] sm:$0xff] (!%p196_p10)   ;;  %p238_p11 = scmp.lt.s32.totalorder (!%p196_p10), %s1314_s28, 63  ;;  %v1723_v5 = vld [vmem:[%s2179_s1 + $0x10] sm:$0xff] (!%p196_p10)  }
  0x10   : > { %1534 = vmatpush3.bf16.msra.mxu0 (!%p196_p10), %v1719_v1  ;;  %1653 = vmatpush3.bf16.msra.mxu1 (!%p196_p10), %v1719_v1  ;;  %v1724_v6 = vld [vmem:[%s2179_s1 + $0x58] sm:$0xff] (!%p196_p10)   ;;  %v1726_v8 = vld [vmem:[%s2179_s1 + $0x60] sm:$0xff] (!%p196_p10)   ;;  %v1728_v10 = vld [vmem:[%s2179_s1 + $0x68] sm:$0xff] (!%p196_p10)   ;;  %s2124_s19 = scalar_lea.hbm (!%p196_p10), %s2181_s3, %s1437_s9  ;;  %s1862_s23 = smov (!%p196_p10), [#allocation3]  }
  0x11   : > { %1535 = vmatprep.subr.bf16.mxu0 (!%p196_p10), %v1720_v2  ;;  %1646 = vmatprep.subr.bf16.mxu1 (!%p196_p10), %v1720_v2  ;;  %v1725_v7 = vld [vmem:[%s2179_s1 + $0x18] sm:$0xff] (!%p196_p10)   ;;  %v1727_v9 = vld [vmem:[%s2179_s1 + $0x20] sm:$0xff] (!%p196_p10)   ;;  %v1729_v13 = vld [vmem:[%s2179_s1 + $0x28] sm:$0xff] (!%p196_p10)  }
  0x12   : > { %v1730_v14 = vld [vmem:[%s2179_s1 + $0x70] sm:$0xff] (!%p196_p10)   ;;  %v1732_v16 = vld [vmem:[%s2179_s1 + $0x78] sm:$0xff] (!%p196_p10)   ;;  %v2029_v51 = vld [vmem:[%s2180_s2] ss:$0 sm:$0xff] (!%p196_p10) }
  0x13   : > { %v1731_v15 = vld [vmem:[%s2179_s1 + $0x30] sm:$0xff] (!%p196_p10)   ;;  %v1733_v17 = vld [vmem:[%s2179_s1 + $0x38] sm:$0xff] (!%p196_p10)   ;;  %v2034_v57 = vld [vmem:[%s2180_s2 + $0x1] ss:$0 sm:$0xff] (!%p196_p10) }
  0x14   : > { %1536 = vmatpush3.bf16.msra.mxu0 (!%p196_p10), %v1721_v3  ;;  %1654 = vmatpush3.bf16.msra.mxu1 (!%p196_p10), %v1721_v3 }
  0x15   : > { %1537 = vmatprep.subr.bf16.mxu0 (!%p196_p10), %v1722_v4  ;;  %1647 = vmatprep.subr.bf16.mxu1 (!%p196_p10), %v1722_v4 }
  0x16   : > { %s2192_s28 = smov (!%p238_p11, %s1314_s28), 63 }
  0x17   : > { %s1404_s26 = sshll.u32 %s2192_s28, 3 }
  0x18   : > { %1538 = vmatpush3.bf16.msra.mxu0 %v1723_v5  ;;  %1655 = vmatpush3.bf16.msra.mxu1 %v1723_v5  ;;  %s1971_s5 = scalar_lea.vmem %s2178_s0, %s1404_s26  ;;  %s1786_s26 = sshll.u32 %s1862_s23, 4  ;;  %s1787_s26 = int_to_ptr.vmem [resolvable:$false] %s1786_s26 }
  0x19   : > { %1539 = vmatprep.subr.bf16.mxu0 %v1724_v6  ;;  %1648 = vmatprep.subr.bf16.mxu1 %v1724_v6  ;;  %v1736_v11 = vld [vmem:[%s1971_s5 + $0x4] ss:$8 sps:$4 sm:$0xff]   ;;  %v1734_v18 = vld [vmem:[%s1971_s5] ss:$8 sps:$4 sm:$0xff]   ;;  %v1740_v20 = vld [vmem:[%s1971_s5 + $0x14] ss:$8 sps:$4 sm:$0xff]  }
  0x1a   : > { %v1739_v12 = vld [vmem:[%s1971_s5 + $0x84] ss:$8 sps:$4 sm:$0xff]   ;;  %683 = vmatprep.mubr.bf16.mxu0 %v1736_v11  ;;  %v1737_v19 = vld [vmem:[%s1971_s5 + $0x80] ss:$8 sps:$4 sm:$0xff]   ;;  %v1742_v21 = vld [vmem:[%s1971_s5 + $0x94] ss:$8 sps:$4 sm:$0xff]  }
  0x1b   : > { %747 = vmatprep.mubr.bf16.mxu1 %v1739_v12  ;;  %v1744_v22 = vld [vmem:[%s1971_s5 + $0x10] ss:$8 sps:$4 sm:$0xff]   ;;  %v1746_v24 = vld [vmem:[%s1971_s5 + $0x24] ss:$8 sps:$4 sm:$0xff]   ;;  %v1750_v26 = vld [vmem:[%s1971_s5 + $0x20] ss:$8 sps:$4 sm:$0xff]  }
  0x1c   : > { %1540 = vmatpush3.bf16.msra.mxu0 %v1725_v7  ;;  %1656 = vmatpush3.bf16.msra.mxu1 %v1725_v7  ;;  %v1745_v23 = vld [vmem:[%s1971_s5 + $0x90] ss:$8 sps:$4 sm:$0xff]   ;;  %v1748_v25 = vld [vmem:[%s1971_s5 + $0xa4] ss:$8 sps:$4 sm:$0xff]   ;;  %v1751_v27 = vld [vmem:[%s1971_s5 + $0xa0] ss:$8 sps:$4 sm:$0xff]  }
  0x1d   : > { %1541 = vmatprep.subr.bf16.mxu0 %v1726_v8  ;;  %1649 = vmatprep.subr.bf16.mxu1 %v1726_v8  ;;  %v1752_v28 = vld [vmem:[%s1971_s5 + $0x34] ss:$8 sps:$4 sm:$0xff]   ;;  %v1756_v30 = vld [vmem:[%s1971_s5 + $0x30] ss:$8 sps:$4 sm:$0xff]   ;;  %v1758_v32 = vld [vmem:[%s1971_s5 + $0x44] ss:$8 sps:$4 sm:$0xff]  }
  0x1e   : > { %v1754_v29 = vld [vmem:[%s1971_s5 + $0xb4] ss:$8 sps:$4 sm:$0xff]   ;;  %v1757_v31 = vld [vmem:[%s1971_s5 + $0xb0] ss:$8 sps:$4 sm:$0xff]   ;;  %v1760_v33 = vld [vmem:[%s1971_s5 + $0xc4] ss:$8 sps:$4 sm:$0xff]  }
  0x1f   : > { %v1762_v34 = vld [vmem:[%s1971_s5 + $0x40] ss:$8 sps:$4 sm:$0xff]   ;;  %v1764_v36 = vld [vmem:[%s1971_s5 + $0x54] ss:$8 sps:$4 sm:$0xff]   ;;  %v1768_v38 = vld [vmem:[%s1971_s5 + $0x50] ss:$8 sps:$4 sm:$0xff]  }
  0x20   : > { %1542 = vmatpush3.bf16.msra.mxu0 %v1727_v9  ;;  %1657 = vmatpush3.bf16.msra.mxu1 %v1727_v9  ;;  %v1763_v35 = vld [vmem:[%s1971_s5 + $0xc0] ss:$8 sps:$4 sm:$0xff]   ;;  %v1766_v37 = vld [vmem:[%s1971_s5 + $0xd4] ss:$8 sps:$4 sm:$0xff]   ;;  %v1769_v39 = vld [vmem:[%s1971_s5 + $0xd0] ss:$8 sps:$4 sm:$0xff]  }
  0x21   : > { %1543 = vmatprep.subr.bf16.mxu0 %v1728_v10  ;;  %1650 = vmatprep.subr.bf16.mxu1 %v1728_v10  ;;  %v1770_v40 = vld [vmem:[%s1971_s5 + $0x64] ss:$8 sps:$4 sm:$0xff]   ;;  %v1774_v42 = vld [vmem:[%s1971_s5 + $0x60] ss:$8 sps:$4 sm:$0xff]   ;;  %v1776_v44 = vld [vmem:[%s1971_s5 + $0x74] ss:$8 sps:$4 sm:$0xff]  }
  0x22   : > { %v1772_v41 = vld [vmem:[%s1971_s5 + $0xe4] ss:$8 sps:$4 sm:$0xff]   ;;  %v1775_v43 = vld [vmem:[%s1971_s5 + $0xe0] ss:$8 sps:$4 sm:$0xff]   ;;  %v1778_v45 = vld [vmem:[%s1971_s5 + $0xf4] ss:$8 sps:$4 sm:$0xff]  }
  0x23   : > { %v1780_v46 = vld [vmem:[%s1971_s5 + $0x70] ss:$8 sps:$4 sm:$0xff]   ;;  %s1788_s27 = scalar_lea.vmem %s1787_s26, 4096 }
  0x24   : > { %1544 = vmatpush3.bf16.msra.mxu0 %v1729_v13  ;;  %1658 = vmatpush3.bf16.msra.mxu1 %v1729_v13  ;;  %v1781_v47 = vld [vmem:[%s1971_s5 + $0xf0] ss:$8 sps:$4 sm:$0xff]   ;;  %s233_s5 = sand.u32 1, %s1844_s13  }
  0x25   : > { %1545 = vmatprep.subr.bf16.mxu0 %v1730_v14  ;;  %1651 = vmatprep.subr.bf16.mxu1 %v1730_v14  ;;  %s1313_s28 = sshll.u32 %s233_s5, 7  ;;  %s2132_s15 = scalar_lea.sflag [#allocation4], %s233_s5 }
  0x26   : > { %s2049_s8 = scalar_lea.vmem [#allocation3], %s1313_s28 }
  0x27   : > { %s1192_s10 = sshll.u32 %s2049_s8, 4  ;;  %s2126_s10 = int_to_ptr.vmem [resolvable:$true] %s1192_s10 }
  0x28   : > { %1546 = vmatpush3.bf16.msra.mxu0 %v1731_v15  ;;  %1659 = vmatpush3.bf16.msra.mxu1 %v1731_v15  ;;  %s1782_s21 = scalar_lea.vmem %s2126_s10, 2048  ;;  %p1789_p1 = scmp.lt.s32.totalorder %s2126_s10, %s1787_s26 }
  0x29   : > { %1547 = vmatprep.subr.bf16.mxu0 %v1732_v16  ;;  %1652 = vmatprep.subr.bf16.mxu1 %v1732_v16  ;;  %p1783_p12 = scmp.ne.s32.totalorder %s2126_s10, %s1782_s21  ;;  %p1790_p2 = scmp.lt.s32.totalorder %s1788_s27, %s1782_s21 }
  0x2b   : > { %p1784_p13 = pnand %p1783_p12, %p1925_p4  ;;  %p1791_p3 = por %p1790_p2, %p1789_p1 }
  0x2c   : > { %1548 = vmatpush3.bf16.msra.mxu0 %v1733_v17  ;;  %1660 = vmatpush3.bf16.msra.mxu1 %v1733_v17 }
  0x2d   : > { %p1785_p0 = pneg %p1784_p13 }
  0x2f   : > { %684 = vmatmul.mubr.bf16.vlgmr.msra.gmra.mrb[0].mxu0 %v1734_v18  ;;  %748 = vmatmul.mubr.bf16.vlgmr.msra.gmra.mrb[0].mxu1 %v1737_v19  ;;  %p1792_p5 = pnand %p1791_p3, %p1785_p0 }
  0x30   : > { %691 = vmatprep.mubr.bf16.mxu0 %v1740_v20  ;;  %755 = vmatprep.mubr.bf16.mxu1 %v1742_v21 }
  0x37   : > { %692 = vmatmul.mubr.bf16.gmra.mrb[4].mxu0 %v1744_v22  ;;  %756 = vmatmul.mubr.bf16.gmra.mrb[4].mxu1 %v1745_v23 }
  0x38   : > { %699 = vmatprep.mubr.bf16.mxu0 %v1746_v24  ;;  %763 = vmatprep.mubr.bf16.mxu1 %v1748_v25 }
  0x3f   : > { %700 = vmatmul.mubr.bf16.gmra.mrb[8].mxu0 %v1750_v26  ;;  %764 = vmatmul.mubr.bf16.gmra.mrb[8].mxu1 %v1751_v27 }
  0x40   : > { %707 = vmatprep.mubr.bf16.mxu0 %v1752_v28  ;;  %771 = vmatprep.mubr.bf16.mxu1 %v1754_v29 }
  0x47   : > { %708 = vmatmul.mubr.bf16.gmra.mrb[12].mxu0 %v1756_v30  ;;  %772 = vmatmul.mubr.bf16.gmra.mrb[12].mxu1 %v1757_v31 }
  0x48   : > { %715 = vmatprep.mubr.bf16.mxu0 %v1758_v32  ;;  %779 = vmatprep.mubr.bf16.mxu1 %v1760_v33 }
  0x4f   : > { %716 = vmatmul.mubr.bf16.gmra.mrb[16].mxu0 %v1762_v34  ;;  %780 = vmatmul.mubr.bf16.gmra.mrb[16].mxu1 %v1763_v35 }
  0x50   : > { %723 = vmatprep.mubr.bf16.mxu0 %v1764_v36  ;;  %787 = vmatprep.mubr.bf16.mxu1 %v1766_v37 }
  0x57   : > { %724 = vmatmul.mubr.bf16.gmra.mrb[20].mxu0 %v1768_v38  ;;  %788 = vmatmul.mubr.bf16.gmra.mrb[20].mxu1 %v1769_v39 }
  0x58   : > { %731 = vmatprep.mubr.bf16.mxu0 %v1770_v40  ;;  %795 = vmatprep.mubr.bf16.mxu1 %v1772_v41 }
  0x5f   : > { %732 = vmatmul.mubr.bf16.gmra.mrb[24].mxu0 %v1774_v42  ;;  %796 = vmatmul.mubr.bf16.gmra.mrb[24].mxu1 %v1775_v43 }
  0x60   : > { %739 = vmatprep.mubr.bf16.mxu0 %v1776_v44  ;;  %803 = vmatprep.mubr.bf16.mxu1 %v1778_v45 }
  0x67   : > { %740 = vmatmul.mubr.bf16.gmra.mrb[28].mxu0 %v1780_v46  ;;  %804 = vmatmul.mubr.bf16.gmra.mrb[28].mxu1 %v1781_v47 }
 0x102   : > { %v1549_v48 = vpop.f32.mrb[0].mxu0  ;;  %v1597_v49 = vpop.f32.mrb[0].mxu1 }
 0x103   : > { %v1550_v50 = vpop.f32.mrb[1].mxu0  ;;  %v1598_v52 = vpop.f32.mrb[1].mxu1 }
 0x104   : > { %v1551_v53 = vadd.f32 %v1550_v50, %v1549_v48  ;;  %v1599_v54 = vadd.f32 %v1598_v52, %v1597_v49  ;;  %v1552_v55 = vpop.f32.mrb[2].mxu0  ;;  %v1600_v56 = vpop.f32.mrb[2].mxu1 }
 0x105   : > { %v1553_v58 = vpop.f32.mrb[3].mxu0  ;;  %v1601_v59 = vpop.f32.mrb[3].mxu1 }
 0x106   : > { %v916_v60 = vmul.f32 %v1551_v53, %v2029_v51  ;;  %v932_v61 = vmul.f32 %v1599_v54, %v2029_v51  ;;  %v1554_v62 = vadd.f32 %v1553_v58, %v1552_v55  ;;  %v1602_v63 = vadd.f32 %v1601_v59, %v1600_v56 }
 0x108   : > { %v953_v0 = vadd.f32 %v2034_v57, %v916_v60  ;;  %v969_v1 = vadd.f32 %v2034_v57, %v932_v61  ;;  %v917_v2 = vmul.f32 %v1554_v62, %v2029_v51  ;;  %v933_v3 = vmul.f32 %v1602_v63, %v2029_v51 }
 0x10a   : > { %v954_v4 = vadd.f32 %v2034_v57, %v917_v2  ;;  %v970_v5 = vadd.f32 %v2034_v57, %v933_v3  ;;  %v1555_v6 = vpop.f32.mrb[4].mxu0  ;;  %v1603_v7 = vpop.f32.mrb[4].mxu1  ;;  %v985_v8 = vmax.f32 %v953_v0, 0.0  ;;  %v1001_v9 = vmax.f32 %v969_v1, 0.0 }
 0x10b   : > { %v1556_v10 = vpop.f32.mrb[5].mxu0  ;;  %v1604_v11 = vpop.f32.mrb[5].mxu1 }
 0x10c   : > { %v986_v12 = vmax.f32 %v954_v4, 0.0  ;;  %v1002_v13 = vmax.f32 %v970_v5, 0.0  ;;  %v1557_v14 = vadd.f32 %v1556_v10, %v1555_v6  ;;  %v1605_v15 = vadd.f32 %v1604_v11, %v1603_v7  ;;  %v1558_v16 = vpop.f32.mrb[6].mxu0  ;;  %v1606_v17 = vpop.f32.mrb[6].mxu1 }
 0x10d   : > { %v1559_v18 = vpop.f32.mrb[7].mxu0  ;;  %v1607_v19 = vpop.f32.mrb[7].mxu1 }
 0x10e   : > { %v1441_v20 = vpack.c.bf16 %v986_v12, %v985_v8  ;;  %v1481_v21 = vpack.c.bf16 %v1002_v13, %v1001_v9  ;;  %v918_v22 = vmul.f32 %v1557_v14, %v2029_v51  ;;  %v934_v23 = vmul.f32 %v1605_v15, %v2029_v51 }
 0x10f   : > { %v1560_v24 = vadd.f32 %v1559_v18, %v1558_v16  ;;  %v1608_v25 = vadd.f32 %v1607_v19, %v1606_v17 }
 0x110   : > { %1442 = vst [vmem:[%s2049_s8] sm:$0xff] %v1441_v20   ;;  %1525 = vst [vmem:[%s2049_s8 + $0x40] sm:$0xff] %v1481_v21   ;;  %v955_v26 = vadd.f32 %v2034_v57, %v918_v22  ;;  %v971_v27 = vadd.f32 %v2034_v57, %v934_v23 }
 0x111   : > { %v919_v28 = vmul.f32 %v1560_v24, %v2029_v51  ;;  %v935_v29 = vmul.f32 %v1608_v25, %v2029_v51 }
 0x112   : > { %v1561_v30 = vpop.f32.mrb[8].mxu0  ;;  %v1609_v31 = vpop.f32.mrb[8].mxu1  ;;  %v987_v40 = vmax.f32 %v955_v26, 0.0  ;;  %v1003_v41 = vmax.f32 %v971_v27, 0.0 }
 0x113   : > { %v956_v32 = vadd.f32 %v2034_v57, %v919_v28  ;;  %v972_v33 = vadd.f32 %v2034_v57, %v935_v29  ;;  %v1562_v34 = vpop.f32.mrb[9].mxu0  ;;  %v1610_v35 = vpop.f32.mrb[9].mxu1 }
 0x114   : > { %v1563_v36 = vadd.f32 %v1562_v34, %v1561_v30  ;;  %v1611_v37 = vadd.f32 %v1610_v35, %v1609_v31  ;;  %v1564_v38 = vpop.f32.mrb[10].mxu0  ;;  %v1612_v39 = vpop.f32.mrb[10].mxu1 }
 0x115   : > { %v988_v42 = vmax.f32 %v956_v32, 0.0  ;;  %v1004_v43 = vmax.f32 %v972_v33, 0.0  ;;  %v1565_v44 = vpop.f32.mrb[11].mxu0  ;;  %v1613_v45 = vpop.f32.mrb[11].mxu1 }
 0x116   : > { %v920_v46 = vmul.f32 %v1563_v36, %v2029_v51  ;;  %v936_v47 = vmul.f32 %v1611_v37, %v2029_v51  ;;  %v1566_v48 = vadd.f32 %v1565_v44, %v1564_v38  ;;  %v1614_v49 = vadd.f32 %v1613_v45, %v1612_v39 }
 0x117   : > { %v1446_v50 = vpack.c.bf16 %v988_v42, %v987_v40  ;;  %v1486_v52 = vpack.c.bf16 %v1004_v43, %v1003_v41 }
 0x118   : > { %v957_v53 = vadd.f32 %v2034_v57, %v920_v46  ;;  %v973_v54 = vadd.f32 %v2034_v57, %v936_v47  ;;  %v921_v55 = vmul.f32 %v1566_v48, %v2029_v51  ;;  %v937_v56 = vmul.f32 %v1614_v49, %v2029_v51 }
 0x119   : > { %1518 = vst [vmem:[%s2049_s8 + $0x8] sm:$0xff] %v1446_v50   ;;  %1526 = vst [vmem:[%s2049_s8 + $0x48] sm:$0xff] %v1486_v52  }
 0x11a   : > { %v958_v58 = vadd.f32 %v2034_v57, %v921_v55  ;;  %v974_v59 = vadd.f32 %v2034_v57, %v937_v56  ;;  %v1567_v60 = vpop.f32.mrb[12].mxu0  ;;  %v1615_v61 = vpop.f32.mrb[12].mxu1  ;;  %v989_v62 = vmax.f32 %v957_v53, 0.0  ;;  %v1005_v63 = vmax.f32 %v973_v54, 0.0 }
 0x11b   : > { %v1568_v0 = vpop.f32.mrb[13].mxu0  ;;  %v1616_v1 = vpop.f32.mrb[13].mxu1 }
 0x11c   : > { %v990_v2 = vmax.f32 %v958_v58, 0.0  ;;  %v1006_v3 = vmax.f32 %v974_v59, 0.0  ;;  %v1569_v4 = vadd.f32 %v1568_v0, %v1567_v60  ;;  %v1617_v5 = vadd.f32 %v1616_v1, %v1615_v61  ;;  %v1570_v6 = vpop.f32.mrb[14].mxu0  ;;  %v1618_v7 = vpop.f32.mrb[14].mxu1 }
 0x11d   : > { %v1571_v8 = vpop.f32.mrb[15].mxu0  ;;  %v1619_v9 = vpop.f32.mrb[15].mxu1 }
 0x11e   : > { %v1451_v10 = vpack.c.bf16 %v990_v2, %v989_v62  ;;  %v1491_v11 = vpack.c.bf16 %v1006_v3, %v1005_v63  ;;  %v922_v12 = vmul.f32 %v1569_v4, %v2029_v51  ;;  %v938_v13 = vmul.f32 %v1617_v5, %v2029_v51 }
 0x11f   : > { %v1572_v14 = vadd.f32 %v1571_v8, %v1570_v6  ;;  %v1620_v15 = vadd.f32 %v1619_v9, %v1618_v7 }
 0x120   : > { %1519 = vst [vmem:[%s2049_s8 + $0x10] sm:$0xff] %v1451_v10   ;;  %1527 = vst [vmem:[%s2049_s8 + $0x50] sm:$0xff] %v1491_v11   ;;  %v959_v16 = vadd.f32 %v2034_v57, %v922_v12  ;;  %v975_v17 = vadd.f32 %v2034_v57, %v938_v13 }
 0x121   : > { %v923_v18 = vmul.f32 %v1572_v14, %v2029_v51  ;;  %v939_v19 = vmul.f32 %v1620_v15, %v2029_v51 }
 0x122   : > { %v1573_v20 = vpop.f32.mrb[16].mxu0  ;;  %v1621_v21 = vpop.f32.mrb[16].mxu1  ;;  %v991_v30 = vmax.f32 %v959_v16, 0.0  ;;  %v1007_v31 = vmax.f32 %v975_v17, 0.0 }
 0x123   : > { %v960_v22 = vadd.f32 %v2034_v57, %v923_v18  ;;  %v976_v23 = vadd.f32 %v2034_v57, %v939_v19  ;;  %v1574_v24 = vpop.f32.mrb[17].mxu0  ;;  %v1622_v25 = vpop.f32.mrb[17].mxu1 }
 0x124   : > { %v1575_v26 = vadd.f32 %v1574_v24, %v1573_v20  ;;  %v1623_v27 = vadd.f32 %v1622_v25, %v1621_v21  ;;  %v1576_v28 = vpop.f32.mrb[18].mxu0  ;;  %v1624_v29 = vpop.f32.mrb[18].mxu1 }
 0x125   : > { %v992_v32 = vmax.f32 %v960_v22, 0.0  ;;  %v1008_v33 = vmax.f32 %v976_v23, 0.0  ;;  %v1577_v34 = vpop.f32.mrb[19].mxu0  ;;  %v1625_v35 = vpop.f32.mrb[19].mxu1 }
 0x126   : > { %v924_v36 = vmul.f32 %v1575_v26, %v2029_v51  ;;  %v940_v37 = vmul.f32 %v1623_v27, %v2029_v51  ;;  %v1578_v38 = vadd.f32 %v1577_v34, %v1576_v28  ;;  %v1626_v39 = vadd.f32 %v1625_v35, %v1624_v29 }
 0x127   : > { %v1456_v40 = vpack.c.bf16 %v992_v32, %v991_v30  ;;  %v1496_v41 = vpack.c.bf16 %v1008_v33, %v1007_v31 }
 0x128   : > { %v961_v42 = vadd.f32 %v2034_v57, %v924_v36  ;;  %v977_v43 = vadd.f32 %v2034_v57, %v940_v37  ;;  %v925_v44 = vmul.f32 %v1578_v38, %v2029_v51  ;;  %v941_v45 = vmul.f32 %v1626_v39, %v2029_v51 }
 0x129   : > { %1520 = vst [vmem:[%s2049_s8 + $0x18] sm:$0xff] %v1456_v40   ;;  %1528 = vst [vmem:[%s2049_s8 + $0x58] sm:$0xff] %v1496_v41  }
 0x12a   : > { %v962_v46 = vadd.f32 %v2034_v57, %v925_v44  ;;  %v978_v47 = vadd.f32 %v2034_v57, %v941_v45  ;;  %v1579_v48 = vpop.f32.mrb[20].mxu0  ;;  %v1627_v49 = vpop.f32.mrb[20].mxu1  ;;  %v993_v50 = vmax.f32 %v961_v42, 0.0  ;;  %v1009_v52 = vmax.f32 %v977_v43, 0.0 }
 0x12b   : > { %v1580_v53 = vpop.f32.mrb[21].mxu0  ;;  %v1628_v54 = vpop.f32.mrb[21].mxu1 }
 0x12c   : > { %v994_v55 = vmax.f32 %v962_v46, 0.0  ;;  %v1010_v56 = vmax.f32 %v978_v47, 0.0  ;;  %v1581_v58 = vadd.f32 %v1580_v53, %v1579_v48  ;;  %v1629_v59 = vadd.f32 %v1628_v54, %v1627_v49  ;;  %v1582_v60 = vpop.f32.mrb[22].mxu0  ;;  %v1630_v61 = vpop.f32.mrb[22].mxu1 }
 0x12d   : > { %v1583_v62 = vpop.f32.mrb[23].mxu0  ;;  %v1631_v63 = vpop.f32.mrb[23].mxu1 }
 0x12e   : > { %v1461_v0 = vpack.c.bf16 %v994_v55, %v993_v50  ;;  %v1501_v1 = vpack.c.bf16 %v1010_v56, %v1009_v52  ;;  %v926_v2 = vmul.f32 %v1581_v58, %v2029_v51  ;;  %v942_v3 = vmul.f32 %v1629_v59, %v2029_v51 }
 0x12f   : > { %v1584_v4 = vadd.f32 %v1583_v62, %v1582_v60  ;;  %v1632_v5 = vadd.f32 %v1631_v63, %v1630_v61 }
 0x130   : > { %1521 = vst [vmem:[%s2049_s8 + $0x20] sm:$0xff] %v1461_v0   ;;  %1529 = vst [vmem:[%s2049_s8 + $0x60] sm:$0xff] %v1501_v1   ;;  %v963_v6 = vadd.f32 %v2034_v57, %v926_v2  ;;  %v979_v7 = vadd.f32 %v2034_v57, %v942_v3 }
 0x131   : > { %v927_v8 = vmul.f32 %v1584_v4, %v2029_v51  ;;  %v943_v9 = vmul.f32 %v1632_v5, %v2029_v51 }
 0x132   : > { %v1585_v10 = vpop.f32.mrb[24].mxu0  ;;  %v1633_v11 = vpop.f32.mrb[24].mxu1  ;;  %v995_v20 = vmax.f32 %v963_v6, 0.0  ;;  %v1011_v21 = vmax.f32 %v979_v7, 0.0 }
 0x133   : > { %v964_v12 = vadd.f32 %v2034_v57, %v927_v8  ;;  %v980_v13 = vadd.f32 %v2034_v57, %v943_v9  ;;  %v1586_v14 = vpop.f32.mrb[25].mxu0  ;;  %v1634_v15 = vpop.f32.mrb[25].mxu1 }
 0x134   : > { %v1587_v16 = vadd.f32 %v1586_v14, %v1585_v10  ;;  %v1635_v17 = vadd.f32 %v1634_v15, %v1633_v11  ;;  %v1588_v18 = vpop.f32.mrb[26].mxu0  ;;  %v1636_v19 = vpop.f32.mrb[26].mxu1 }
 0x135   : > { %v996_v22 = vmax.f32 %v964_v12, 0.0  ;;  %v1012_v23 = vmax.f32 %v980_v13, 0.0  ;;  %v1589_v24 = vpop.f32.mrb[27].mxu0  ;;  %v1637_v25 = vpop.f32.mrb[27].mxu1 }
 0x136   : > { %v928_v26 = vmul.f32 %v1587_v16, %v2029_v51  ;;  %v944_v27 = vmul.f32 %v1635_v17, %v2029_v51  ;;  %v1590_v28 = vadd.f32 %v1589_v24, %v1588_v18  ;;  %v1638_v29 = vadd.f32 %v1637_v25, %v1636_v19 }
 0x137   : > { %v1466_v30 = vpack.c.bf16 %v996_v22, %v995_v20  ;;  %v1506_v31 = vpack.c.bf16 %v1012_v23, %v1011_v21 }
 0x138   : > { %v965_v32 = vadd.f32 %v2034_v57, %v928_v26  ;;  %v981_v33 = vadd.f32 %v2034_v57, %v944_v27  ;;  %v929_v34 = vmul.f32 %v1590_v28, %v2029_v51  ;;  %v945_v35 = vmul.f32 %v1638_v29, %v2029_v51 }
 0x139   : > { %1522 = vst [vmem:[%s2049_s8 + $0x28] sm:$0xff] %v1466_v30   ;;  %1530 = vst [vmem:[%s2049_s8 + $0x68] sm:$0xff] %v1506_v31  }
 0x13a   : > { %v966_v36 = vadd.f32 %v2034_v57, %v929_v34  ;;  %v982_v37 = vadd.f32 %v2034_v57, %v945_v35  ;;  %v1591_v38 = vpop.f32.mrb[28].mxu0  ;;  %v1639_v39 = vpop.f32.mrb[28].mxu1  ;;  %v997_v40 = vmax.f32 %v965_v32, 0.0  ;;  %v1013_v41 = vmax.f32 %v981_v33, 0.0 }
 0x13b   : > { %v1592_v42 = vpop.f32.mrb[29].mxu0  ;;  %v1640_v43 = vpop.f32.mrb[29].mxu1 }
 0x13c   : > { %v998_v44 = vmax.f32 %v966_v36, 0.0  ;;  %v1014_v45 = vmax.f32 %v982_v37, 0.0  ;;  %v1593_v46 = vadd.f32 %v1592_v42, %v1591_v38  ;;  %v1641_v47 = vadd.f32 %v1640_v43, %v1639_v39  ;;  %v1594_v48 = vpop.f32.mrb[30].mxu0  ;;  %v1642_v49 = vpop.f32.mrb[30].mxu1 }
 0x13d   : > { %v1595_v50 = vpop.f32.mrb[31].mxu0  ;;  %v1643_v52 = vpop.f32.mrb[31].mxu1 }
 0x13e   : > { %v1471_v53 = vpack.c.bf16 %v998_v44, %v997_v40  ;;  %v1511_v54 = vpack.c.bf16 %v1014_v45, %v1013_v41  ;;  %v930_v55 = vmul.f32 %v1593_v46, %v2029_v51  ;;  %v946_v56 = vmul.f32 %v1641_v47, %v2029_v51 }
 0x13f   : > { %v1596_v58 = vadd.f32 %v1595_v50, %v1594_v48  ;;  %v1644_v59 = vadd.f32 %v1643_v52, %v1642_v49 }
 0x140   : > { %1523 = vst [vmem:[%s2049_s8 + $0x30] sm:$0xff] %v1471_v53   ;;  %1531 = vst [vmem:[%s2049_s8 + $0x70] sm:$0xff] %v1511_v54   ;;  %v967_v60 = vadd.f32 %v2034_v57, %v930_v55  ;;  %v983_v61 = vadd.f32 %v2034_v57, %v946_v56 }
 0x141   : > { %v931_v62 = vmul.f32 %v1596_v58, %v2029_v51  ;;  %v947_v63 = vmul.f32 %v1644_v59, %v2029_v51 }
 0x142   : > { %v999_v2 = vmax.f32 %v967_v60, 0.0  ;;  %v1015_v3 = vmax.f32 %v983_v61, 0.0 }
 0x143   : > { %v968_v0 = vadd.f32 %v2034_v57, %v931_v62  ;;  %v984_v1 = vadd.f32 %v2034_v57, %v947_v63 }
 0x145   : > { %v1000_v4 = vmax.f32 %v968_v0, 0.0  ;;  %v1016_v5 = vmax.f32 %v984_v1, 0.0 }
 0x147   : > { %v1476_v51 = vpack.c.bf16 %v1000_v4, %v999_v2  ;;  %v1516_v6 = vpack.c.bf16 %v1016_v5, %v1015_v3 }
 0x149   : > { %1524 = vst [vmem:[%s2049_s8 + $0x38] sm:$0xff] %v1476_v51   ;;  %1532 = vst [vmem:[%s2049_s8 + $0x78] sm:$0xff] %v1516_v6  }
 0x14a   : > { %1795 = shalt.err (!%p1792_p5)
}
 0x14b   : > { %s1796_s29 = scalar_lea.hbm %s2124_s19, 2048  ;;  %s1800_s6 = scalar_lea.hbm %s2181_s3, 4096 }
 0x14c   : > { %p1797_p6 = scmp.ne.s32.totalorder %s2124_s19, %s1796_s29  ;;  %p1801_p10 = scmp.lt.u32.totalorder %s2124_s19, %s2181_s3 }
 0x14d   : > { %p1802_p11 = scmp.lt.u32.totalorder %s1800_s6, %s1796_s29  ;;  %p1804_p13 = scmp.lt.u32.totalorder %s1796_s29, %s2124_s19 }
 0x14e   : > { %p1798_p7 = pnand %p1797_p6, %p1925_p4 }
 0x14f   : > { %p1803_p12 = por %p1802_p11, %p1801_p10 }
 0x150   : > { %p1799_p9 = pneg %p1798_p7 }
 0x151   : > { %p1805_p0 = por %p1804_p13, %p1803_p12 }
 0x153   : > { %p1806_p1 = pnand %p1805_p0, %p1799_p9 }
 0x155   : > { %1809 = shalt.err (!%p1806_p1)
}
 0x156   : > { %s1863_s28 = smov 64   ;;  %s1864_s8 = smov 4  }
 0x157   : > { %1661 = dma.vmem_to_hbm [thread:$0]  (%p1925_p4), %s2126_s10, 2048, %s2124_s19, %s2132_s15, %s1863_s28, %s1863_s28, %s1864_s8  }
 0x158 PF: > { %p1667_p2 = scmp.ge.s32.totalorder %s1860_s17, 2  ;;  %s1207_s9 = sand.u32 1, %s1840_s12  }
 0x159   : > { %s1208_s11 = scalar_lea.sflag [#allocation4], %s1207_s9 }
 0x15a   : > { %p1664_p3 = pnand %p1667_p2, %p1932_p8 }
 0x15c   : > { %1835 = dma.done.wait (!%p1664_p3), %s1208_s11, 2048  }
 0x15d   : > { %1837 = vsyncadd (!%p1664_p3), %s1208_s11, 4294965248  ;;  %s16_s17 = sadd.s32 1, %s1860_s17   ;;  %s2184_s12 = smov %s1844_s13 }
 0x15e   : > { %p13_p5 = scmp.ge.s32.totalorder %s16_s17, 4   ;;  %s2185_s13 = smov %s1848_s14 }
 0x15f   : > { %s2186_s14 = smov %s1938_s25  ;;  %s2187_s15 = smov %s1856_s16 }
 0x160   : > { %s2188_s16 = smov %s2190_s20  ;;  %15 = sbr.rel (!%p13_p5) target bundleno = 4 (0x4), region = 81 }
 0x167   :  { %1213 = vsyncpa [#allocation4], 1 }
 0x168   :  { %1215 = vsyncpa [#allocation4 + $0x1], 1 }

</bundles_post_ra>
